<compile_context>
chip_gen: v5e
topology: v5e:2x2
jax: 0.10.0
libtpu: 0.0.40
codegen_flags: <defaults>
</compile_context>

<pallas_src>
import functools
from typing import NamedTuple

import jax
import jax.numpy as jnp
from jax.experimental import pallas as pl
from jax.experimental.pallas import tpu as pltpu

_LANE = 128                     # lane width (last-dim alignment)
_SUB_ACT = 16                   # sublane alignment for bf16 activation tiles
_COMPUTE_DTYPE = jnp.bfloat16   # MXU-native dtype on v5e/v6e/v7x
_VMEM_BUDGET = 64 << 20         # plan for v7x worst case (64 MiB per TC)
_VMEM_HEADROOM = 8 << 20


def _round_up(x, m):
    return ((x + m - 1) // m) * m


class _MLPMeta(NamedTuple):
    in_dim: int
    out_dim: int


# ----------------------------- kernel ---------------------------------------
def _fused_mlp_kernel(*refs, num_layers: int):
    # refs = (x_ref, w0_ref, b0_ref, w1_ref, b1_ref, ..., o_ref)
    # x_ref: (tb, in_pad) bf16   w_l: (k_pad, n_pad) bf16 (pre-transposed)
    # b_l:   (1, n_pad)  f32     o_ref: (tb, out_pad_last) f32
    x_ref = refs[0]
    o_ref = refs[-1]
    h = x_ref[...]
    for l in range(num_layers):
        w = refs[1 + 2 * l][...]
        b = refs[2 + 2 * l][...]
        y = jnp.dot(h, w, preferred_element_type=jnp.float32) + b
        if l < num_layers - 1:                 # ReLU on all but fc_out
            y = jnp.maximum(y, 0.0).astype(_COMPUTE_DTYPE)
        h = y
    o_ref[...] = h.astype(o_ref.dtype)


# ------------------------- one-time param prep -------------------------------
def prepare_intellik_net_params(params, input_dim):
    """Transpose to (in, out), zero-pad to 128 lanes, cast to bf16 — once."""
    prepared = []
    prev_pad = _round_up(input_dim, _LANE)
    for (w, b) in params:
        fan_out, fan_in = w.shape
        out_pad = _round_up(fan_out, _LANE)
        w_t = jnp.zeros((prev_pad, out_pad), _COMPUTE_DTYPE)
        w_t = w_t.at[:fan_in, :fan_out].set(w.T.astype(_COMPUTE_DTYPE))
        b_p = jnp.zeros((1, out_pad), jnp.float32)
        b_p = b_p.at[:, :fan_out].set(b.astype(jnp.float32))
        prepared.append((w_t, b_p))
        prev_pad = out_pad
    meta = _MLPMeta(in_dim=int(input_dim), out_dim=int(params[-1][0].shape[0]))
    return prepared, meta


# ----------------------------- tiling ----------------------------------------
def _choose_batch_tile(batch, per_row_bytes, resident_bytes):
    """Largest bounded batch tile that fits the per-TC VMEM budget."""
    b_aligned = _round_up(max(batch, 1), _SUB_ACT)
    avail = max(_VMEM_BUDGET - resident_bytes - _VMEM_HEADROOM, 1 << 20)
    tb = _SUB_ACT
    for cand in (1024, 512, 256, 128, 64, 32, 16):
        if cand <= b_aligned and 2 * cand * per_row_bytes <= avail:
            tb = cand
            break
    # v7x megacore: prefer >=2 grid steps so both TensorCores get work.
    if _round_up(b_aligned, tb) // tb < 2 and b_aligned >= 2 * _SUB_ACT:
        tb = max(_SUB_ACT, _round_up((b_aligned + 1) // 2, _SUB_ACT))
    return tb


# ----------------------------- forward ---------------------------------------
def intellik_net_forward(prepared_params, x, *, meta, single_buffer_params=True):
    """Fused forward: relu(x@W1+b1) -> ... -> x@Wout+bout, one pallas_call."""
    batch = x.shape[0]
    num_layers = len(prepared_params)
    in_pad = prepared_params[0][0].shape[0]
    final_out_pad = prepared_params[-1][0].shape[1]

    pbuf = 1 if single_buffer_params else 2
    resident_bytes = pbuf * sum(
        w.size * w.dtype.itemsize + b.size * b.dtype.itemsize
        for (w, b) in prepared_params)
    # TODO(synk): if resident weights alone approach the VMEM budget (very large
    # hidden dims), the biggest layers should move to a K/N-tiled grid axis
    # instead of full residency; not implemented here.

    act_itemsize = jnp.dtype(_COMPUTE_DTYPE).itemsize
    per_row_bytes = in_pad * act_itemsize + final_out_pad * 4
    tb = _choose_batch_tile(batch, per_row_bytes, resident_bytes)
    b_pad = _round_up(batch, tb)
    grid = b_pad // tb

    # Skip the extra HBM pad copy when the input is already aligned.
    if batch == b_pad and meta.in_dim == in_pad:
        x_p = x.astype(_COMPUTE_DTYPE)
    else:
        x_p = jnp.zeros((b_pad, in_pad), _COMPUTE_DTYPE)
        x_p = x_p.at[:batch, :meta.in_dim].set(x.astype(_COMPUTE_DTYPE))

    param_kwargs = dict(memory_space=pltpu.VMEM)
    if single_buffer_params:
        # Constant index_map -> fetched once; 1 buffer halves param VMEM.
        param_kwargs["pipeline_mode"] = pl.Buffered(1)

    in_specs = [pl.BlockSpec((tb, in_pad), lambda i: (i, 0),
                             memory_space=pltpu.VMEM)]
    flat_args = [x_p]
    for (w_t, b_p) in prepared_params:
        in_specs.append(pl.BlockSpec(w_t.shape, lambda i: (0, 0), **param_kwargs))
        in_specs.append(pl.BlockSpec(b_p.shape, lambda i: (0, 0), **param_kwargs))
        flat_args.append(w_t)
        flat_args.append(b_p)

    vmem_limit = int(min(
        max(resident_bytes + 2 * tb * per_row_bytes + _VMEM_HEADROOM, 16 << 20),
        128 << 20))

    out_padded = pl.pallas_call(
        functools.partial(_fused_mlp_kernel, num_layers=num_layers),
        out_shape=jax.ShapeDtypeStruct((b_pad, final_out_pad), jnp.float32),
        grid=(grid,),
        in_specs=in_specs,
        out_specs=pl.BlockSpec((tb, final_out_pad), lambda i: (i, 0),
                               memory_space=pltpu.VMEM),
        compiler_params=pltpu.CompilerParams(
            dimension_semantics=("parallel",),
            vmem_limit_bytes=vmem_limit),
    )(*flat_args)

    if batch == b_pad and meta.out_dim == final_out_pad:
        return out_padded
    return out_padded[:batch, :meta.out_dim]


# ----------------------------- init ------------------------------------------
def init_intellik_net_params(key, input_dim, layer_num, hidden_layer_dim_list,
                             out_dim):
    """PyTorch-style (uniform +-1/sqrt(fan_in)) init; weights (out, in)."""
    dims = [input_dim] + list(hidden_layer_dim_list) + [out_dim]
    params = []
    for i in range(len(dims) - 1):
        fan_in, fan_out = dims[i], dims[i + 1]
        key, kw, kb = jax.random.split(key, 3)
        bound = 1.0 / jnp.sqrt(fan_in)
        w = jax.random.uniform(kw, (fan_out, fan_in), jnp.float32,
                               minval=-bound, maxval=bound)
        b = jax.random.uniform(kb, (fan_out,), jnp.float32,
                               minval=-bound, maxval=bound)
        params.append((w, b))
    return params


if __name__ == "__main__":
    input_dim = 32
    layer_num = 3
    hidden_layer_dim_list = [64, 48, 32]
    out_dim = 16
    batch = 8

    key = jax.random.PRNGKey(0)
    key, kx = jax.random.split(key)
    x = jax.random.normal(kx, (batch, input_dim), jnp.float32)

    params = init_intellik_net_params(key, input_dim, layer_num,
                                      hidden_layer_dim_list, out_dim)
    prepared, meta = prepare_intellik_net_params(params, input_dim)

    fwd = jax.jit(functools.partial(intellik_net_forward, meta=meta))
    try:
        out = fwd(prepared, x)
        jax.block_until_ready(out)
    except Exception:
        # Fallback if this JAX build rejects single-buffered (Buffered(1)) params.
        fwd = jax.jit(functools.partial(intellik_net_forward, meta=meta,
                                        single_buffer_params=False))
        out = fwd(prepared, x)
        jax.block_until_ready(out)

    # Pure-JAX references (PyTorch forward semantics).
    def ref_forward(params, x):
        h = x
        for (w, b) in params[:-1]:
            h = jnp.maximum(h @ w.T + b, 0.0)
        w_out, b_out = params[-1]
        return h @ w_out.T + b_out

    def ref_forward_bf16(params, x):
        h = x.astype(jnp.bfloat16)
        for (w, b) in params[:-1]:
            y = jnp.dot(h, w.T.astype(jnp.bfloat16),
                        preferred_element_type=jnp.float32) + b
            h = jnp.maximum(y, 0.0).astype(jnp.bfloat16)
        w_out, b_out = params[-1]
        return jnp.dot(h, w_out.T.astype(jnp.bfloat16),
                       preferred_element_type=jnp.float32) + b_out

    ref_f32 = ref_forward(params, x)
    ref_bf16 = ref_forward_bf16(params, x)
    assert out.shape == (batch, out_dim)
    assert jnp.allclose(out, ref_f32, atol=5e-2, rtol=5e-2), (
        float(jnp.max(jnp.abs(out - ref_f32))))
    assert jnp.allclose(out, ref_bf16, atol=2e-3, rtol=2e-3), (
        float(jnp.max(jnp.abs(out - ref_bf16))))

    print("KERNEL_OK")
</pallas_src>

<mosaic_0001>
module attributes {stable_mosaic.version = 11 : i64} {
  func.func @_fused_mlp_kernel(%arg0: i32, %arg1: memref<16x128xbf16, #tpu.memory_space<vmem>>, %arg2: memref<128x128xbf16, #tpu.memory_space<vmem>>, %arg3: memref<1x128xf32, #tpu.memory_space<vmem>>, %arg4: memref<128x128xbf16, #tpu.memory_space<vmem>>, %arg5: memref<1x128xf32, #tpu.memory_space<vmem>>, %arg6: memref<128x128xbf16, #tpu.memory_space<vmem>>, %arg7: memref<1x128xf32, #tpu.memory_space<vmem>>, %arg8: memref<128x128xbf16, #tpu.memory_space<vmem>>, %arg9: memref<1x128xf32, #tpu.memory_space<vmem>>, %arg10: memref<16x128xf32, #tpu.memory_space<vmem>>) attributes {dimension_semantics = [#tpu.dimension_semantics<parallel>], iteration_bounds = array<i64: 1>, scalar_prefetch = 0 : i64, scratch_operands = 0 : i64, tpu.core_type = #tpu.core_type<tc>, window_params = [{transform_indices = @transform_0, window_bounds = array<i64: 16, 128>}, {pipeline_mode = #tpu.pipeline_mode<synchronous>, transform_indices = @transform_1, window_bounds = array<i64: 128, 128>}, {pipeline_mode = #tpu.pipeline_mode<synchronous>, transform_indices = @transform_2, window_bounds = array<i64: 1, 128>}, {pipeline_mode = #tpu.pipeline_mode<synchronous>, transform_indices = @transform_3, window_bounds = array<i64: 128, 128>}, {pipeline_mode = #tpu.pipeline_mode<synchronous>, transform_indices = @transform_4, window_bounds = array<i64: 1, 128>}, {pipeline_mode = #tpu.pipeline_mode<synchronous>, transform_indices = @transform_5, window_bounds = array<i64: 128, 128>}, {pipeline_mode = #tpu.pipeline_mode<synchronous>, transform_indices = @transform_6, window_bounds = array<i64: 1, 128>}, {pipeline_mode = #tpu.pipeline_mode<synchronous>, transform_indices = @transform_7, window_bounds = array<i64: 128, 128>}, {pipeline_mode = #tpu.pipeline_mode<synchronous>, transform_indices = @transform_8, window_bounds = array<i64: 1, 128>}, {transform_indices = @transform_9, window_bounds = array<i64: 16, 128>}]} {
    %c0 = arith.constant 0 : index
    %c0_0 = arith.constant 0 : index
    %0 = vector.load %arg1[%c0, %c0_0] : memref<16x128xbf16, #tpu.memory_space<vmem>>, vector<16x128xbf16>
    %c0_1 = arith.constant 0 : index
    %c0_2 = arith.constant 0 : index
    %1 = vector.load %arg2[%c0_1, %c0_2] : memref<128x128xbf16, #tpu.memory_space<vmem>>, vector<128x128xbf16>
    %c0_3 = arith.constant 0 : index
    %c0_4 = arith.constant 0 : index
    %2 = vector.load %arg3[%c0_3, %c0_4] : memref<1x128xf32, #tpu.memory_space<vmem>>, vector<1x128xf32>
    %cst = arith.constant dense<0.000000e+00> : vector<16x128xf32>
    %3 = tpu.matmul %0, %1, %cst {dimension_numbers = #tpu.dot_dimension_numbers<[1], [0], [0], [1], [0, 0, 1, 1], [], []>} : vector<16x128xbf16>, vector<128x128xbf16>, vector<16x128xf32> -> vector<16x128xf32>
    %4 = vector.broadcast %2 : vector<1x128xf32> to vector<16x128xf32>
    %5 = arith.addf %3, %4 : vector<16x128xf32>
    %cst_5 = arith.constant 0.000000e+00 : f32
    %6 = vector.broadcast %cst_5 : f32 to vector<16x128xf32>
    %7 = arith.maximumf %5, %6 : vector<16x128xf32>
    %8 = arith.truncf %7 : vector<16x128xf32> to vector<16x128xbf16>
    %c0_6 = arith.constant 0 : index
    %c0_7 = arith.constant 0 : index
    %9 = vector.load %arg4[%c0_6, %c0_7] : memref<128x128xbf16, #tpu.memory_space<vmem>>, vector<128x128xbf16>
    %c0_8 = arith.constant 0 : index
    %c0_9 = arith.constant 0 : index
    %10 = vector.load %arg5[%c0_8, %c0_9] : memref<1x128xf32, #tpu.memory_space<vmem>>, vector<1x128xf32>
    %cst_10 = arith.constant dense<0.000000e+00> : vector<16x128xf32>
    %11 = tpu.matmul %8, %9, %cst_10 {dimension_numbers = #tpu.dot_dimension_numbers<[1], [0], [0], [1], [0, 0, 1, 1], [], []>} : vector<16x128xbf16>, vector<128x128xbf16>, vector<16x128xf32> -> vector<16x128xf32>
    %12 = vector.broadcast %10 : vector<1x128xf32> to vector<16x128xf32>
    %13 = arith.addf %11, %12 : vector<16x128xf32>
    %cst_11 = arith.constant 0.000000e+00 : f32
    %14 = vector.broadcast %cst_11 : f32 to vector<16x128xf32>
    %15 = arith.maximumf %13, %14 : vector<16x128xf32>
    %16 = arith.truncf %15 : vector<16x128xf32> to vector<16x128xbf16>
    %c0_12 = arith.constant 0 : index
    %c0_13 = arith.constant 0 : index
    %17 = vector.load %arg6[%c0_12, %c0_13] : memref<128x128xbf16, #tpu.memory_space<vmem>>, vector<128x128xbf16>
    %c0_14 = arith.constant 0 : index
    %c0_15 = arith.constant 0 : index
    %18 = vector.load %arg7[%c0_14, %c0_15] : memref<1x128xf32, #tpu.memory_space<vmem>>, vector<1x128xf32>
    %cst_16 = arith.constant dense<0.000000e+00> : vector<16x128xf32>
    %19 = tpu.matmul %16, %17, %cst_16 {dimension_numbers = #tpu.dot_dimension_numbers<[1], [0], [0], [1], [0, 0, 1, 1], [], []>} : vector<16x128xbf16>, vector<128x128xbf16>, vector<16x128xf32> -> vector<16x128xf32>
    %20 = vector.broadcast %18 : vector<1x128xf32> to vector<16x128xf32>
    %21 = arith.addf %19, %20 : vector<16x128xf32>
    %cst_17 = arith.constant 0.000000e+00 : f32
    %22 = vector.broadcast %cst_17 : f32 to vector<16x128xf32>
    %23 = arith.maximumf %21, %22 : vector<16x128xf32>
    %24 = arith.truncf %23 : vector<16x128xf32> to vector<16x128xbf16>
    %c0_18 = arith.constant 0 : index
    %c0_19 = arith.constant 0 : index
    %25 = vector.load %arg8[%c0_18, %c0_19] : memref<128x128xbf16, #tpu.memory_space<vmem>>, vector<128x128xbf16>
    %c0_20 = arith.constant 0 : index
    %c0_21 = arith.constant 0 : index
    %26 = vector.load %arg9[%c0_20, %c0_21] : memref<1x128xf32, #tpu.memory_space<vmem>>, vector<1x128xf32>
    %cst_22 = arith.constant dense<0.000000e+00> : vector<16x128xf32>
    %27 = tpu.matmul %24, %25, %cst_22 {dimension_numbers = #tpu.dot_dimension_numbers<[1], [0], [0], [1], [0, 0, 1, 1], [], []>} : vector<16x128xbf16>, vector<128x128xbf16>, vector<16x128xf32> -> vector<16x128xf32>
    %28 = vector.broadcast %26 : vector<1x128xf32> to vector<16x128xf32>
    %29 = arith.addf %27, %28 : vector<16x128xf32>
    %c0_23 = arith.constant 0 : index
    %c0_24 = arith.constant 0 : index
    %30 = vector.load %arg10[%c0_23, %c0_24] : memref<16x128xf32, #tpu.memory_space<vmem>>, vector<16x128xf32>
    tpu.vector_store %arg10[%c0_23, %c0_24], %29 {strides = array<i32>} : memref<16x128xf32, #tpu.memory_space<vmem>>, vector<16x128xf32>,
    return
  }
  func.func @transform_0(%arg0: i32) -> (i32, i32) {
    %c0_i32 = arith.constant 0 : i32
    %c0_i32_0 = arith.constant 0 : i32
    return %arg0, %c0_i32 : i32, i32
  }
  func.func @transform_1(%arg0: i32) -> (i32, i32) {
    %c0_i32 = arith.constant 0 : i32
    %c0_i32_0 = arith.constant 0 : i32
    %c0_i32_1 = arith.constant 0 : i32
    return %c0_i32, %c0_i32_0 : i32, i32
  }
  func.func @transform_2(%arg0: i32) -> (i32, i32) {
    %c0_i32 = arith.constant 0 : i32
    %c0_i32_0 = arith.constant 0 : i32
    %c0_i32_1 = arith.constant 0 : i32
    return %c0_i32, %c0_i32_0 : i32, i32
  }
  func.func @transform_3(%arg0: i32) -> (i32, i32) {
    %c0_i32 = arith.constant 0 : i32
    %c0_i32_0 = arith.constant 0 : i32
    %c0_i32_1 = arith.constant 0 : i32
    return %c0_i32, %c0_i32_0 : i32, i32
  }
  func.func @transform_4(%arg0: i32) -> (i32, i32) {
    %c0_i32 = arith.constant 0 : i32
    %c0_i32_0 = arith.constant 0 : i32
    %c0_i32_1 = arith.constant 0 : i32
    return %c0_i32, %c0_i32_0 : i32, i32
  }
  func.func @transform_5(%arg0: i32) -> (i32, i32) {
    %c0_i32 = arith.constant 0 : i32
    %c0_i32_0 = arith.constant 0 : i32
    %c0_i32_1 = arith.constant 0 : i32
    return %c0_i32, %c0_i32_0 : i32, i32
  }
  func.func @transform_6(%arg0: i32) -> (i32, i32) {
    %c0_i32 = arith.constant 0 : i32
    %c0_i32_0 = arith.constant 0 : i32
    %c0_i32_1 = arith.constant 0 : i32
    return %c0_i32, %c0_i32_0 : i32, i32
  }
  func.func @transform_7(%arg0: i32) -> (i32, i32) {
    %c0_i32 = arith.constant 0 : i32
    %c0_i32_0 = arith.constant 0 : i32
    %c0_i32_1 = arith.constant 0 : i32
    return %c0_i32, %c0_i32_0 : i32, i32
  }
  func.func @transform_8(%arg0: i32) -> (i32, i32) {
    %c0_i32 = arith.constant 0 : i32
    %c0_i32_0 = arith.constant 0 : i32
    %c0_i32_1 = arith.constant 0 : i32
    return %c0_i32, %c0_i32_0 : i32, i32
  }
  func.func @transform_9(%arg0: i32) -> (i32, i32) {
    %c0_i32 = arith.constant 0 : i32
    %c0_i32_0 = arith.constant 0 : i32
    return %arg0, %c0_i32 : i32, i32
  }
}

module attributes {stable_mosaic.version = 11 : i64} {
  func.func @_fused_mlp_kernel(%arg0: i32, %arg1: memref<16x128xbf16, #tpu.memory_space<vmem>>, %arg2: memref<128x128xbf16, #tpu.memory_space<vmem>>, %arg3: memref<1x128xf32, #tpu.memory_space<vmem>>, %arg4: memref<128x128xbf16, #tpu.memory_space<vmem>>, %arg5: memref<1x128xf32, #tpu.memory_space<vmem>>, %arg6: memref<128x128xbf16, #tpu.memory_space<vmem>>, %arg7: memref<1x128xf32, #tpu.memory_space<vmem>>, %arg8: memref<128x128xbf16, #tpu.memory_space<vmem>>, %arg9: memref<1x128xf32, #tpu.memory_space<vmem>>, %arg10: memref<16x128xf32, #tpu.memory_space<vmem>>) attributes {dimension_semantics = [#tpu.dimension_semantics<parallel>], iteration_bounds = array<i64: 1>, scalar_prefetch = 0 : i64, scratch_operands = 0 : i64, tpu.core_type = #tpu.core_type<tc>, window_params = [{transform_indices = @transform_0, window_bounds = array<i64: 16, 128>}, {pipeline_mode = #tpu.pipeline_mode<synchronous>, transform_indices = @transform_1, window_bounds = array<i64: 128, 128>}, {pipeline_mode = #tpu.pipeline_mode<synchronous>, transform_indices = @transform_2, window_bounds = array<i64: 1, 128>}, {pipeline_mode = #tpu.pipeline_mode<synchronous>, transform_indices = @transform_3, window_bounds = array<i64: 128, 128>}, {pipeline_mode = #tpu.pipeline_mode<synchronous>, transform_indices = @transform_4, window_bounds = array<i64: 1, 128>}, {pipeline_mode = #tpu.pipeline_mode<synchronous>, transform_indices = @transform_5, window_bounds = array<i64: 128, 128>}, {pipeline_mode = #tpu.pipeline_mode<synchronous>, transform_indices = @transform_6, window_bounds = array<i64: 1, 128>}, {pipeline_mode = #tpu.pipeline_mode<synchronous>, transform_indices = @transform_7, window_bounds = array<i64: 128, 128>}, {pipeline_mode = #tpu.pipeline_mode<synchronous>, transform_indices = @transform_8, window_bounds = array<i64: 1, 128>}, {transform_indices = @transform_9, window_bounds = array<i64: 16, 128>}]} {
    %c0 = arith.constant 0 : index
    %c0_0 = arith.constant 0 : index
    %0 = vector.load %arg1[%c0, %c0_0] : memref<16x128xbf16, #tpu.memory_space<vmem>>, vector<16x128xbf16>
    %c0_1 = arith.constant 0 : index
    %c0_2 = arith.constant 0 : index
    %1 = vector.load %arg2[%c0_1, %c0_2] : memref<128x128xbf16, #tpu.memory_space<vmem>>, vector<128x128xbf16>
    %c0_3 = arith.constant 0 : index
    %c0_4 = arith.constant 0 : index
    %2 = vector.load %arg3[%c0_3, %c0_4] : memref<1x128xf32, #tpu.memory_space<vmem>>, vector<1x128xf32>
    %cst = arith.constant dense<0.000000e+00> : vector<16x128xf32>
    %3 = tpu.matmul %0, %1, %cst {dimension_numbers = #tpu.dot_dimension_numbers<[1], [0], [0], [1], [0, 0, 1, 1], [], []>} : vector<16x128xbf16>, vector<128x128xbf16>, vector<16x128xf32> -> vector<16x128xf32>
    %4 = vector.broadcast %2 : vector<1x128xf32> to vector<16x128xf32>
    %5 = arith.addf %3, %4 : vector<16x128xf32>
    %cst_5 = arith.constant 0.000000e+00 : f32
    %6 = vector.broadcast %cst_5 : f32 to vector<16x128xf32>
    %7 = arith.maximumf %5, %6 : vector<16x128xf32>
    %8 = arith.truncf %7 : vector<16x128xf32> to vector<16x128xbf16>
    %c0_6 = arith.constant 0 : index
    %c0_7 = arith.constant 0 : index
    %9 = vector.load %arg4[%c0_6, %c0_7] : memref<128x128xbf16, #tpu.memory_space<vmem>>, vector<128x128xbf16>
    %c0_8 = arith.constant 0 : index
    %c0_9 = arith.constant 0 : index
    %10 = vector.load %arg5[%c0_8, %c0_9] : memref<1x128xf32, #tpu.memory_space<vmem>>, vector<1x128xf32>
    %cst_10 = arith.constant dense<0.000000e+00> : vector<16x128xf32>
    %11 = tpu.matmul %8, %9, %cst_10 {dimension_numbers = #tpu.dot_dimension_numbers<[1], [0], [0], [1], [0, 0, 1, 1], [], []>} : vector<16x128xbf16>, vector<128x128xbf16>, vector<16x128xf32> -> vector<16x128xf32>
    %12 = vector.broadcast %10 : vector<1x128xf32> to vector<16x128xf32>
    %13 = arith.addf %11, %12 : vector<16x128xf32>
    %cst_11 = arith.constant 0.000000e+00 : f32
    %14 = vector.broadcast %cst_11 : f32 to vector<16x128xf32>
    %15 = arith.maximumf %13, %14 : vector<16x128xf32>
    %16 = arith.truncf %15 : vector<16x128xf32> to vector<16x128xbf16>
    %c0_12 = arith.constant 0 : index
    %c0_13 = arith.constant 0 : index
    %17 = vector.load %arg6[%c0_12, %c0_13] : memref<128x128xbf16, #tpu.memory_space<vmem>>, vector<128x128xbf16>
    %c0_14 = arith.constant 0 : index
    %c0_15 = arith.constant 0 : index
    %18 = vector.load %arg7[%c0_14, %c0_15] : memref<1x128xf32, #tpu.memory_space<vmem>>, vector<1x128xf32>
    %cst_16 = arith.constant dense<0.000000e+00> : vector<16x128xf32>
    %19 = tpu.matmul %16, %17, %cst_16 {dimension_numbers = #tpu.dot_dimension_numbers<[1], [0], [0], [1], [0, 0, 1, 1], [], []>} : vector<16x128xbf16>, vector<128x128xbf16>, vector<16x128xf32> -> vector<16x128xf32>
    %20 = vector.broadcast %18 : vector<1x128xf32> to vector<16x128xf32>
    %21 = arith.addf %19, %20 : vector<16x128xf32>
    %cst_17 = arith.constant 0.000000e+00 : f32
    %22 = vector.broadcast %cst_17 : f32 to vector<16x128xf32>
    %23 = arith.maximumf %21, %22 : vector<16x128xf32>
    %24 = arith.truncf %23 : vector<16x128xf32> to vector<16x128xbf16>
    %c0_18 = arith.constant 0 : index
    %c0_19 = arith.constant 0 : index
    %25 = vector.load %arg8[%c0_18, %c0_19] : memref<128x128xbf16, #tpu.memory_space<vmem>>, vector<128x128xbf16>
    %c0_20 = arith.constant 0 : index
    %c0_21 = arith.constant 0 : index
    %26 = vector.load %arg9[%c0_20, %c0_21] : memref<1x128xf32, #tpu.memory_space<vmem>>, vector<1x128xf32>
    %cst_22 = arith.constant dense<0.000000e+00> : vector<16x128xf32>
    %27 = tpu.matmul %24, %25, %cst_22 {dimension_numbers = #tpu.dot_dimension_numbers<[1], [0], [0], [1], [0, 0, 1, 1], [], []>} : vector<16x128xbf16>, vector<128x128xbf16>, vector<16x128xf32> -> vector<16x128xf32>
    %28 = vector.broadcast %26 : vector<1x128xf32> to vector<16x128xf32>
    %29 = arith.addf %27, %28 : vector<16x128xf32>
    %c0_23 = arith.constant 0 : index
    %c0_24 = arith.constant 0 : index
    %30 = vector.load %arg10[%c0_23, %c0_24] : memref<16x128xf32, #tpu.memory_space<vmem>>, vector<16x128xf32>
    tpu.vector_store %arg10[%c0_23, %c0_24], %29 {strides = array<i32>} : memref<16x128xf32, #tpu.memory_space<vmem>>, vector<16x128xf32>,
    return
  }
  func.func @transform_0(%arg0: i32) -> (i32, i32) {
    %c0_i32 = arith.constant 0 : i32
    %c0_i32_0 = arith.constant 0 : i32
    return %arg0, %c0_i32 : i32, i32
  }
  func.func @transform_1(%arg0: i32) -> (i32, i32) {
    %c0_i32 = arith.constant 0 : i32
    %c0_i32_0 = arith.constant 0 : i32
    %c0_i32_1 = arith.constant 0 : i32
    return %c0_i32, %c0_i32_0 : i32, i32
  }
  func.func @transform_2(%arg0: i32) -> (i32, i32) {
    %c0_i32 = arith.constant 0 : i32
    %c0_i32_0 = arith.constant 0 : i32
    %c0_i32_1 = arith.constant 0 : i32
    return %c0_i32, %c0_i32_0 : i32, i32
  }
  func.func @transform_3(%arg0: i32) -> (i32, i32) {
    %c0_i32 = arith.constant 0 : i32
    %c0_i32_0 = arith.constant 0 : i32
    %c0_i32_1 = arith.constant 0 : i32
    return %c0_i32, %c0_i32_0 : i32, i32
  }
  func.func @transform_4(%arg0: i32) -> (i32, i32) {
    %c0_i32 = arith.constant 0 : i32
    %c0_i32_0 = arith.constant 0 : i32
    %c0_i32_1 = arith.constant 0 : i32
    return %c0_i32, %c0_i32_0 : i32, i32
  }
  func.func @transform_5(%arg0: i32) -> (i32, i32) {
    %c0_i32 = arith.constant 0 : i32
    %c0_i32_0 = arith.constant 0 : i32
    %c0_i32_1 = arith.constant 0 : i32
    return %c0_i32, %c0_i32_0 : i32, i32
  }
  func.func @transform_6(%arg0: i32) -> (i32, i32) {
    %c0_i32 = arith.constant 0 : i32
    %c0_i32_0 = arith.constant 0 : i32
    %c0_i32_1 = arith.constant 0 : i32
    return %c0_i32, %c0_i32_0 : i32, i32
  }
  func.func @transform_7(%arg0: i32) -> (i32, i32) {
    %c0_i32 = arith.constant 0 : i32
    %c0_i32_0 = arith.constant 0 : i32
    %c0_i32_1 = arith.constant 0 : i32
    return %c0_i32, %c0_i32_0 : i32, i32
  }
  func.func @transform_8(%arg0: i32) -> (i32, i32) {
    %c0_i32 = arith.constant 0 : i32
    %c0_i32_0 = arith.constant 0 : i32
    %c0_i32_1 = arith.constant 0 : i32
    return %c0_i32, %c0_i32_0 : i32, i32
  }
  func.func @transform_9(%arg0: i32) -> (i32, i32) {
    %c0_i32 = arith.constant 0 : i32
    %c0_i32_0 = arith.constant 0 : i32
    return %arg0, %c0_i32 : i32, i32
  }
}

</mosaic_0001>

<bundles_post_ra>
// kernel: intellik_net_forward.1
= control target key start
LH: loop header
LB: loop body
LE: loop exit
PB: predicated region body
PF: predicated region fallthrough
CT: control target
= control target key end

     0   :  { %14 = vsyncpa [#allocation3], 0  ;;  %s815_s0 = inlined_call_operand.vmem [shape: bf16[16,128], index: 0, kind: input, shape index: {}]   ;;  %s816_s1 = inlined_call_operand.hbm [shape: bf16[128,128], index: 1, kind: input, shape index: {}]   ;;  %s817_s2 = inlined_call_operand.vmem [shape: f32[1,128], index: 2, kind: input, shape index: {}]   ;;  %s818_s3 = inlined_call_operand.hbm [shape: bf16[128,128], index: 3, kind: input, shape index: {}]   ;;  %s819_s4 = inlined_call_operand.vmem [shape: f32[1,128], index: 4, kind: input, shape index: {}]   ;;  %s820_s5 = inlined_call_operand.hbm [shape: bf16[128,128], index: 5, kind: input, shape index: {}]   ;;  %s821_s6 = inlined_call_operand.vmem [shape: f32[1,128], index: 6, kind: input, shape index: {}]   ;;  %s822_s7 = inlined_call_operand.hbm [shape: bf16[128,128], index: 7, kind: input, shape index: {}]   ;;  %s823_s8 = inlined_call_operand.vmem [shape: f32[1,128], index: 8, kind: input, shape index: {}]   ;;  %s824_s9 = inlined_call_operand.vmem [shape: f32[16,128], index: 9, kind: output, shape index: {}]  }
   0x1   :  { %15 = vsyncpa [#allocation5], 0 }
   0x2   :  { %16 = vsyncpa [#allocation8], 0  ;;  %s38_s11 = sshll.u32 %s818_s3, 4  ;;  %s726_s12 = smov [#allocation4]   ;;  %s39_s11 = int_to_ptr.hbm [resolvable:$true] %s38_s11 }
   0x3   :  { %s40_s13 = sshll.u32 %s726_s12, 4  ;;  %s23_s16 = sshll.u32 %s816_s1, 4  ;;  %s41_s13 = int_to_ptr.vmem [resolvable:$true] %s40_s13  ;;  %s24_s16 = int_to_ptr.hbm [resolvable:$true] %s23_s16 }
   0x4   :  { %s727_s17 = smov 64   ;;  %s728_s18 = smov 4  }
   0x5   :  { %46 = dma.hbm_to_vmem [thread:$0]  %s39_s11, 1024, %s41_s13, [#allocation5], %s727_s17, %s727_s17, %s728_s18  }
   0x6   :  { %s729_s19 = smov [#allocation2]   ;;  %s53_s23 = sshll.u32 %s820_s5, 4  ;;  %s54_s23 = int_to_ptr.hbm [resolvable:$true] %s53_s23 }
   0x7   :  { %s25_s20 = sshll.u32 %s729_s19, 4  ;;  %s68_s25 = sshll.u32 %s822_s7, 4  ;;  %s26_s20 = int_to_ptr.vmem [resolvable:$true] %s25_s20  ;;  %s69_s25 = int_to_ptr.hbm [resolvable:$true] %s68_s25 }
   0x8   :  { %31 = dma.hbm_to_vmem [thread:$0]  %s24_s16, 1024, %s26_s20, [#allocation3], %s727_s17, %s727_s17, %s728_s18  }
   0x9   :  { %s730_s26 = smov [#allocation6]   ;;  %s731_s1 = smov [#allocation7]  }
   0xa   :  { %s55_s27 = sshll.u32 %s730_s26, 4  ;;  %s70_s28 = sshll.u32 %s731_s1, 4  ;;  %s56_s27 = int_to_ptr.vmem [resolvable:$true] %s55_s27  ;;  %s71_s28 = int_to_ptr.vmem [resolvable:$true] %s70_s28 }
   0xb   :  { %61 = dma.hbm_to_vmem [thread:$0]  %s54_s23, 1024, %s56_s27, [#allocation5], %s727_s17, %s727_s17, %s728_s18  }
   0xc   :  { %76 = dma.hbm_to_vmem [thread:$0]  %s69_s25, 1024, %s71_s28, [#allocation8], %s727_s17, %s727_s17, %s728_s18  }
   0xd   :  { %720 = dma.done.wait [#allocation3], 1024  }
   0xe   :  { %721 = vsyncadd [#allocation3], 4294966272 }
   0xf   :  { %722 = dma.done.wait [#allocation5], 2048  }
  0x10   :  { %723 = vsyncadd [#allocation5], 4294965248 }
  0x11   :  { %724 = dma.done.wait [#allocation8], 1024  }
  0x12   :  { %725 = vsyncadd [#allocation8], 4294966272  ;;  %v589_v0 = vld [vmem:[#allocation2 + $0x38] sm:$0xff]  ;;  %v588_v1 = vld [vmem:[#allocation2 + $0x30] sm:$0xff] }
  0x13   :  { %171 = vmatpush.bf16.msra.mxu0 %v589_v0  ;;  %v597_v2 = vld [vmem:[#allocation4 + $0x38] sm:$0xff]  ;;  %v596_v3 = vld [vmem:[#allocation4 + $0x30] sm:$0xff]  ;;  %v587_v4 = vld [vmem:[#allocation2 + $0x28] sm:$0xff] }
  0x14   :  { %256 = vmatpush.bf16.msra.mxu1 %v597_v2  ;;  %v595_v5 = vld [vmem:[#allocation4 + $0x28] sm:$0xff]  ;;  %v586_v6 = vld [vmem:[#allocation2 + $0x20] sm:$0xff]  ;;  %v585_v8 = vld [vmem:[#allocation2 + $0x18] sm:$0xff] }
  0x15   :  { %v594_v7 = vld [vmem:[#allocation4 + $0x20] sm:$0xff]  ;;  %v584_v9 = vld [vmem:[#allocation2 + $0x10] sm:$0xff]  ;;  %v583_v10 = vld [vmem:[#allocation2 + $0x8] sm:$0xff] }
  0x16   :  { %v582_v11 = vld [vmem:[#allocation2] sm:$0xff]  ;;  %v593_v13 = vld [vmem:[#allocation4 + $0x18] sm:$0xff]  ;;  %v592_v14 = vld [vmem:[#allocation4 + $0x10] sm:$0xff] }
  0x17   :  { %172 = vmatpush.bf16.msra.mxu0 %v588_v1  ;;  %v581_v12 = vld [vmem:[%s815_s0] sm:$0xff]  ;;  %v591_v15 = vld [vmem:[#allocation4 + $0x8] sm:$0xff]  ;;  %v605_v17 = vld [vmem:[#allocation6 + $0x38] sm:$0xff] }
  0x18   :  { %257 = vmatpush.bf16.msra.mxu1 %v596_v3  ;;  %v590_v16 = vld [vmem:[#allocation4] sm:$0xff]  ;;  %341 = vmatpush.bf16.msra.mxu2 %v605_v17  ;;  %v604_v18 = vld [vmem:[#allocation6 + $0x30] sm:$0xff]  ;;  %v603_v19 = vld [vmem:[#allocation6 + $0x28] sm:$0xff] }
  0x19   :  { %v602_v20 = vld [vmem:[#allocation6 + $0x20] sm:$0xff]  ;;  %v601_v29 = vld [vmem:[#allocation6 + $0x18] sm:$0xff]  ;;  %v600_v30 = vld [vmem:[#allocation6 + $0x10] sm:$0xff] }
  0x1a   :  { %v620_v22 = vld [vmem:[%s817_s2] ss:$0 sm:$0xff]  ;;  %v599_v31 = vld [vmem:[#allocation6 + $0x8] sm:$0xff]  ;;  %v613_v33 = vld [vmem:[#allocation7 + $0x38] sm:$0xff] }
  0x1b   :  { %173 = vmatpush.bf16.msra.mxu0 %v587_v4  ;;  %v598_v32 = vld [vmem:[#allocation6] sm:$0xff]  ;;  %426 = vmatpush.bf16.msra.mxu3 %v613_v33  ;;  %v612_v34 = vld [vmem:[#allocation7 + $0x30] sm:$0xff]  ;;  %v611_v35 = vld [vmem:[#allocation7 + $0x28] sm:$0xff] }
  0x1c   :  { %258 = vmatpush.bf16.msra.mxu1 %v595_v5  ;;  %342 = vmatpush.bf16.msra.mxu2 %v604_v18  ;;  %v610_v36 = vld [vmem:[#allocation7 + $0x20] sm:$0xff]  ;;  %v609_v45 = vld [vmem:[#allocation7 + $0x18] sm:$0xff]  ;;  %v608_v46 = vld [vmem:[#allocation7 + $0x10] sm:$0xff] }
  0x1d   :  { %v621_v38 = vld [vmem:[%s819_s4] ss:$0 sm:$0xff]  ;;  %v607_v47 = vld [vmem:[#allocation7 + $0x8] sm:$0xff] }
  0x1e   :  { %v606_v48 = vld [vmem:[#allocation7] sm:$0xff] }
  0x1f   :  { %174 = vmatpush.bf16.msra.mxu0 %v586_v6  ;;  %427 = vmatpush.bf16.msra.mxu3 %v612_v34  ;;  %v622_v50 = vld [vmem:[%s821_s6] ss:$0 sm:$0xff] }
  0x20   :  { %259 = vmatpush.bf16.msra.mxu1 %v594_v7  ;;  %343 = vmatpush.bf16.msra.mxu2 %v603_v19  ;;  %v623_v57 = vld [vmem:[%s823_s8] ss:$0 sm:$0xff] }
  0x23   :  { %175 = vmatpush.bf16.msra.mxu0 %v585_v8  ;;  %428 = vmatpush.bf16.msra.mxu3 %v611_v35 }
  0x24   :  { %260 = vmatpush.bf16.msra.mxu1 %v593_v13  ;;  %344 = vmatpush.bf16.msra.mxu2 %v602_v20 }
  0x27   :  { %176 = vmatpush.bf16.msra.mxu0 %v584_v9  ;;  %429 = vmatpush.bf16.msra.mxu3 %v610_v36 }
  0x28   :  { %261 = vmatpush.bf16.msra.mxu1 %v592_v14  ;;  %345 = vmatpush.bf16.msra.mxu2 %v601_v29 }
  0x2b   :  { %177 = vmatpush.bf16.msra.mxu0 %v583_v10  ;;  %430 = vmatpush.bf16.msra.mxu3 %v609_v45 }
  0x2c   :  { %262 = vmatpush.bf16.msra.mxu1 %v591_v15  ;;  %346 = vmatpush.bf16.msra.mxu2 %v600_v30 }
  0x2f   :  { %178 = vmatpush.bf16.msra.mxu0 %v582_v11  ;;  %431 = vmatpush.bf16.msra.mxu3 %v608_v46 }
  0x30   :  { %263 = vmatpush.bf16.msra.mxu1 %v590_v16  ;;  %347 = vmatpush.bf16.msra.mxu2 %v599_v31 }
  0x32   :  { %179 = vmatmul.bf16.vlgmr.msra.gmra.mxu0 %v581_v12 }
  0x33   :  { %432 = vmatpush.bf16.msra.mxu3 %v607_v47 }
  0x34   :  { %348 = vmatpush.bf16.msra.mxu2 %v598_v32 }
  0x37   :  { %433 = vmatpush.bf16.msra.mxu3 %v606_v48 }
  0xaf   :  { %v180_v21 = vpop.f32.mrf.mxu0 }
  0xb0   :  { %v181_v23 = vadd.f32 %v620_v22, %v180_v21 }
  0xb2   :  { %v185_v26 = vmax.f32 %v181_v23, 0.0 }
  0xb7   :  { %v182_v24 = vpop.f32.mrf.mxu0 }
  0xb8   :  { %v183_v25 = vadd.f32 %v620_v22, %v182_v24 }
  0xba   :  { %v186_v27 = vmax.f32 %v183_v25, 0.0 }
  0xbc   :  { %v187_v28 = vpack.c.bf16 %v186_v27, %v185_v26 }
  0xbe   :  { %264 = vmatmul.bf16.vlgmr.msra.gmra.mxu1 %v187_v28 }
 0x13b   :  { %v265_v37 = vpop.f32.mrf.mxu1 }
 0x13c   :  { %v266_v39 = vadd.f32 %v621_v38, %v265_v37 }
 0x13e   :  { %v270_v42 = vmax.f32 %v266_v39, 0.0 }
 0x143   :  { %v267_v40 = vpop.f32.mrf.mxu1 }
 0x144   :  { %v268_v41 = vadd.f32 %v621_v38, %v267_v40 }
 0x146   :  { %v271_v43 = vmax.f32 %v268_v41, 0.0 }
 0x148   :  { %v272_v44 = vpack.c.bf16 %v271_v43, %v270_v42 }
 0x14a   :  { %349 = vmatmul.bf16.vlgmr.msra.gmra.mxu2 %v272_v44 }
 0x1cd   :  { %v350_v49 = vpop.f32.mrf.mxu2 }
 0x1ce   :  { %v351_v51 = vadd.f32 %v622_v50, %v350_v49 }
 0x1d0   :  { %v355_v54 = vmax.f32 %v351_v51, 0.0 }
 0x1d5   :  { %v352_v52 = vpop.f32.mrf.mxu2 }
 0x1d6   :  { %v353_v53 = vadd.f32 %v622_v50, %v352_v52 }
 0x1d8   :  { %v356_v55 = vmax.f32 %v353_v53, 0.0 }
 0x1da   :  { %v357_v56 = vpack.c.bf16 %v356_v55, %v355_v54 }
 0x1dc   :  { %434 = vmatmul.bf16.vlgmr.msra.gmra.mxu3 %v357_v56 }
 0x25f   :  { %v435_v58 = vpop.f32.mrf.mxu3 }
 0x260   :  { %v436_v59 = vadd.f32 %v623_v57, %v435_v58 }
 0x262   :  { %440 = vst [vmem:[%s824_s9] sm:$0xff] %v436_v59 }
 0x267   :  { %v437_v60 = vpop.f32.mrf.mxu3 }
 0x268   :  { %v438_v61 = vadd.f32 %v623_v57, %v437_v60 }
 0x26a   :  { %441 = vst [vmem:[%s824_s9 + $0x8] sm:$0xff] %v438_v61 }
 0x26b   :  { %446 = vsyncpa [#allocation3], 1 }
 0x26c   :  { %447 = vsyncpa [#allocation5], 1 }
 0x26d   :  { %448 = vsyncpa [#allocation8], 1 }

// kernel: intellik_net_forward.1
= control target key start
LH: loop header
LB: loop body
LE: loop exit
PB: predicated region body
PF: predicated region fallthrough
CT: control target
= control target key end

     0   :  { %14 = vsyncpa [#allocation3], 0  ;;  %s815_s0 = inlined_call_operand.vmem [shape: bf16[16,128], index: 0, kind: input, shape index: {}]   ;;  %s816_s1 = inlined_call_operand.hbm [shape: bf16[128,128], index: 1, kind: input, shape index: {}]   ;;  %s817_s2 = inlined_call_operand.vmem [shape: f32[1,128], index: 2, kind: input, shape index: {}]   ;;  %s818_s3 = inlined_call_operand.hbm [shape: bf16[128,128], index: 3, kind: input, shape index: {}]   ;;  %s819_s4 = inlined_call_operand.vmem [shape: f32[1,128], index: 4, kind: input, shape index: {}]   ;;  %s820_s5 = inlined_call_operand.hbm [shape: bf16[128,128], index: 5, kind: input, shape index: {}]   ;;  %s821_s6 = inlined_call_operand.vmem [shape: f32[1,128], index: 6, kind: input, shape index: {}]   ;;  %s822_s7 = inlined_call_operand.hbm [shape: bf16[128,128], index: 7, kind: input, shape index: {}]   ;;  %s823_s8 = inlined_call_operand.vmem [shape: f32[1,128], index: 8, kind: input, shape index: {}]   ;;  %s824_s9 = inlined_call_operand.vmem [shape: f32[16,128], index: 9, kind: output, shape index: {}]  }
   0x1   :  { %15 = vsyncpa [#allocation5], 0 }
   0x2   :  { %16 = vsyncpa [#allocation8], 0  ;;  %s38_s11 = sshll.u32 %s818_s3, 4  ;;  %s726_s12 = smov [#allocation4]   ;;  %s39_s11 = int_to_ptr.hbm [resolvable:$true] %s38_s11 }
   0x3   :  { %s40_s13 = sshll.u32 %s726_s12, 4  ;;  %s23_s16 = sshll.u32 %s816_s1, 4  ;;  %s41_s13 = int_to_ptr.vmem [resolvable:$true] %s40_s13  ;;  %s24_s16 = int_to_ptr.hbm [resolvable:$true] %s23_s16 }
   0x4   :  { %s727_s17 = smov 64   ;;  %s728_s18 = smov 4  }
   0x5   :  { %46 = dma.hbm_to_vmem [thread:$0]  %s39_s11, 1024, %s41_s13, [#allocation5], %s727_s17, %s727_s17, %s728_s18  }
   0x6   :  { %s729_s19 = smov [#allocation2]   ;;  %s53_s23 = sshll.u32 %s820_s5, 4  ;;  %s54_s23 = int_to_ptr.hbm [resolvable:$true] %s53_s23 }
   0x7   :  { %s25_s20 = sshll.u32 %s729_s19, 4  ;;  %s68_s25 = sshll.u32 %s822_s7, 4  ;;  %s26_s20 = int_to_ptr.vmem [resolvable:$true] %s25_s20  ;;  %s69_s25 = int_to_ptr.hbm [resolvable:$true] %s68_s25 }
   0x8   :  { %31 = dma.hbm_to_vmem [thread:$0]  %s24_s16, 1024, %s26_s20, [#allocation3], %s727_s17, %s727_s17, %s728_s18  }
   0x9   :  { %s730_s26 = smov [#allocation6]   ;;  %s731_s1 = smov [#allocation7]  }
   0xa   :  { %s55_s27 = sshll.u32 %s730_s26, 4  ;;  %s70_s28 = sshll.u32 %s731_s1, 4  ;;  %s56_s27 = int_to_ptr.vmem [resolvable:$true] %s55_s27  ;;  %s71_s28 = int_to_ptr.vmem [resolvable:$true] %s70_s28 }
   0xb   :  { %61 = dma.hbm_to_vmem [thread:$0]  %s54_s23, 1024, %s56_s27, [#allocation5], %s727_s17, %s727_s17, %s728_s18  }
   0xc   :  { %76 = dma.hbm_to_vmem [thread:$0]  %s69_s25, 1024, %s71_s28, [#allocation8], %s727_s17, %s727_s17, %s728_s18  }
   0xd   :  { %720 = dma.done.wait [#allocation3], 1024  }
   0xe   :  { %721 = vsyncadd [#allocation3], 4294966272 }
   0xf   :  { %722 = dma.done.wait [#allocation5], 2048  }
  0x10   :  { %723 = vsyncadd [#allocation5], 4294965248 }
  0x11   :  { %724 = dma.done.wait [#allocation8], 1024  }
  0x12   :  { %725 = vsyncadd [#allocation8], 4294966272  ;;  %v589_v0 = vld [vmem:[#allocation2 + $0x38] sm:$0xff]  ;;  %v588_v1 = vld [vmem:[#allocation2 + $0x30] sm:$0xff] }
  0x13   :  { %171 = vmatpush.bf16.msra.mxu0 %v589_v0  ;;  %v597_v2 = vld [vmem:[#allocation4 + $0x38] sm:$0xff]  ;;  %v596_v3 = vld [vmem:[#allocation4 + $0x30] sm:$0xff]  ;;  %v587_v4 = vld [vmem:[#allocation2 + $0x28] sm:$0xff] }
  0x14   :  { %256 = vmatpush.bf16.msra.mxu1 %v597_v2  ;;  %v595_v5 = vld [vmem:[#allocation4 + $0x28] sm:$0xff]  ;;  %v586_v6 = vld [vmem:[#allocation2 + $0x20] sm:$0xff]  ;;  %v585_v8 = vld [vmem:[#allocation2 + $0x18] sm:$0xff] }
  0x15   :  { %v594_v7 = vld [vmem:[#allocation4 + $0x20] sm:$0xff]  ;;  %v584_v9 = vld [vmem:[#allocation2 + $0x10] sm:$0xff]  ;;  %v583_v10 = vld [vmem:[#allocation2 + $0x8] sm:$0xff] }
  0x16   :  { %v582_v11 = vld [vmem:[#allocation2] sm:$0xff]  ;;  %v593_v13 = vld [vmem:[#allocation4 + $0x18] sm:$0xff]  ;;  %v592_v14 = vld [vmem:[#allocation4 + $0x10] sm:$0xff] }
  0x17   :  { %172 = vmatpush.bf16.msra.mxu0 %v588_v1  ;;  %v581_v12 = vld [vmem:[%s815_s0] sm:$0xff]  ;;  %v591_v15 = vld [vmem:[#allocation4 + $0x8] sm:$0xff]  ;;  %v605_v17 = vld [vmem:[#allocation6 + $0x38] sm:$0xff] }
  0x18   :  { %257 = vmatpush.bf16.msra.mxu1 %v596_v3  ;;  %v590_v16 = vld [vmem:[#allocation4] sm:$0xff]  ;;  %341 = vmatpush.bf16.msra.mxu2 %v605_v17  ;;  %v604_v18 = vld [vmem:[#allocation6 + $0x30] sm:$0xff]  ;;  %v603_v19 = vld [vmem:[#allocation6 + $0x28] sm:$0xff] }
  0x19   :  { %v602_v20 = vld [vmem:[#allocation6 + $0x20] sm:$0xff]  ;;  %v601_v29 = vld [vmem:[#allocation6 + $0x18] sm:$0xff]  ;;  %v600_v30 = vld [vmem:[#allocation6 + $0x10] sm:$0xff] }
  0x1a   :  { %v620_v22 = vld [vmem:[%s817_s2] ss:$0 sm:$0xff]  ;;  %v599_v31 = vld [vmem:[#allocation6 + $0x8] sm:$0xff]  ;;  %v613_v33 = vld [vmem:[#allocation7 + $0x38] sm:$0xff] }
  0x1b   :  { %173 = vmatpush.bf16.msra.mxu0 %v587_v4  ;;  %v598_v32 = vld [vmem:[#allocation6] sm:$0xff]  ;;  %426 = vmatpush.bf16.msra.mxu3 %v613_v33  ;;  %v612_v34 = vld [vmem:[#allocation7 + $0x30] sm:$0xff]  ;;  %v611_v35 = vld [vmem:[#allocation7 + $0x28] sm:$0xff] }
  0x1c   :  { %258 = vmatpush.bf16.msra.mxu1 %v595_v5  ;;  %342 = vmatpush.bf16.msra.mxu2 %v604_v18  ;;  %v610_v36 = vld [vmem:[#allocation7 + $0x20] sm:$0xff]  ;;  %v609_v45 = vld [vmem:[#allocation7 + $0x18] sm:$0xff]  ;;  %v608_v46 = vld [vmem:[#allocation7 + $0x10] sm:$0xff] }
  0x1d   :  { %v621_v38 = vld [vmem:[%s819_s4] ss:$0 sm:$0xff]  ;;  %v607_v47 = vld [vmem:[#allocation7 + $0x8] sm:$0xff] }
  0x1e   :  { %v606_v48 = vld [vmem:[#allocation7] sm:$0xff] }
  0x1f   :  { %174 = vmatpush.bf16.msra.mxu0 %v586_v6  ;;  %427 = vmatpush.bf16.msra.mxu3 %v612_v34  ;;  %v622_v50 = vld [vmem:[%s821_s6] ss:$0 sm:$0xff] }
  0x20   :  { %259 = vmatpush.bf16.msra.mxu1 %v594_v7  ;;  %343 = vmatpush.bf16.msra.mxu2 %v603_v19  ;;  %v623_v57 = vld [vmem:[%s823_s8] ss:$0 sm:$0xff] }
  0x23   :  { %175 = vmatpush.bf16.msra.mxu0 %v585_v8  ;;  %428 = vmatpush.bf16.msra.mxu3 %v611_v35 }
  0x24   :  { %260 = vmatpush.bf16.msra.mxu1 %v593_v13  ;;  %344 = vmatpush.bf16.msra.mxu2 %v602_v20 }
  0x27   :  { %176 = vmatpush.bf16.msra.mxu0 %v584_v9  ;;  %429 = vmatpush.bf16.msra.mxu3 %v610_v36 }
  0x28   :  { %261 = vmatpush.bf16.msra.mxu1 %v592_v14  ;;  %345 = vmatpush.bf16.msra.mxu2 %v601_v29 }
  0x2b   :  { %177 = vmatpush.bf16.msra.mxu0 %v583_v10  ;;  %430 = vmatpush.bf16.msra.mxu3 %v609_v45 }
  0x2c   :  { %262 = vmatpush.bf16.msra.mxu1 %v591_v15  ;;  %346 = vmatpush.bf16.msra.mxu2 %v600_v30 }
  0x2f   :  { %178 = vmatpush.bf16.msra.mxu0 %v582_v11  ;;  %431 = vmatpush.bf16.msra.mxu3 %v608_v46 }
  0x30   :  { %263 = vmatpush.bf16.msra.mxu1 %v590_v16  ;;  %347 = vmatpush.bf16.msra.mxu2 %v599_v31 }
  0x32   :  { %179 = vmatmul.bf16.vlgmr.msra.gmra.mxu0 %v581_v12 }
  0x33   :  { %432 = vmatpush.bf16.msra.mxu3 %v607_v47 }
  0x34   :  { %348 = vmatpush.bf16.msra.mxu2 %v598_v32 }
  0x37   :  { %433 = vmatpush.bf16.msra.mxu3 %v606_v48 }
  0xaf   :  { %v180_v21 = vpop.f32.mrf.mxu0 }
  0xb0   :  { %v181_v23 = vadd.f32 %v620_v22, %v180_v21 }
  0xb2   :  { %v185_v26 = vmax.f32 %v181_v23, 0.0 }
  0xb7   :  { %v182_v24 = vpop.f32.mrf.mxu0 }
  0xb8   :  { %v183_v25 = vadd.f32 %v620_v22, %v182_v24 }
  0xba   :  { %v186_v27 = vmax.f32 %v183_v25, 0.0 }
  0xbc   :  { %v187_v28 = vpack.c.bf16 %v186_v27, %v185_v26 }
  0xbe   :  { %264 = vmatmul.bf16.vlgmr.msra.gmra.mxu1 %v187_v28 }
 0x13b   :  { %v265_v37 = vpop.f32.mrf.mxu1 }
 0x13c   :  { %v266_v39 = vadd.f32 %v621_v38, %v265_v37 }
 0x13e   :  { %v270_v42 = vmax.f32 %v266_v39, 0.0 }
 0x143   :  { %v267_v40 = vpop.f32.mrf.mxu1 }
 0x144   :  { %v268_v41 = vadd.f32 %v621_v38, %v267_v40 }
 0x146   :  { %v271_v43 = vmax.f32 %v268_v41, 0.0 }
 0x148   :  { %v272_v44 = vpack.c.bf16 %v271_v43, %v270_v42 }
 0x14a   :  { %349 = vmatmul.bf16.vlgmr.msra.gmra.mxu2 %v272_v44 }
 0x1cd   :  { %v350_v49 = vpop.f32.mrf.mxu2 }
 0x1ce   :  { %v351_v51 = vadd.f32 %v622_v50, %v350_v49 }
 0x1d0   :  { %v355_v54 = vmax.f32 %v351_v51, 0.0 }
 0x1d5   :  { %v352_v52 = vpop.f32.mrf.mxu2 }
 0x1d6   :  { %v353_v53 = vadd.f32 %v622_v50, %v352_v52 }
 0x1d8   :  { %v356_v55 = vmax.f32 %v353_v53, 0.0 }
 0x1da   :  { %v357_v56 = vpack.c.bf16 %v356_v55, %v355_v54 }
 0x1dc   :  { %434 = vmatmul.bf16.vlgmr.msra.gmra.mxu3 %v357_v56 }
 0x25f   :  { %v435_v58 = vpop.f32.mrf.mxu3 }
 0x260   :  { %v436_v59 = vadd.f32 %v623_v57, %v435_v58 }
 0x262   :  { %440 = vst [vmem:[%s824_s9] sm:$0xff] %v436_v59 }
 0x267   :  { %v437_v60 = vpop.f32.mrf.mxu3 }
 0x268   :  { %v438_v61 = vadd.f32 %v623_v57, %v437_v60 }
 0x26a   :  { %441 = vst [vmem:[%s824_s9 + $0x8] sm:$0xff] %v438_v61 }
 0x26b   :  { %446 = vsyncpa [#allocation3], 1 }
 0x26c   :  { %447 = vsyncpa [#allocation5], 1 }
 0x26d   :  { %448 = vsyncpa [#allocation8], 1 }

</bundles_post_ra>
